<compile_context>
chip_gen: v7x
topology: tpu7x:2x2x1
jax: 0.10.0
libtpu: 0.0.40
codegen_flags: <defaults>
</compile_context>

<pallas_src>
from collections import namedtuple

import numpy as np
import jax
import jax.numpy as jnp
from jax import lax
from jax.experimental import pallas as pl
from jax.experimental.pallas import tpu as pltpu


ConvDims = namedtuple("ConvDims", "h_in w_in cin kh kw cout oh ow rw_in rw_out")


def conv_geometry(in_hw, conv_params):
    """Per-layer geometry for valid, stride-1 convs on the (n*h, w*c) row layout."""
    h, w = in_hw
    dims = []
    for (w_hwio, _b) in conv_params:
        kh, kw, cin, cout = w_hwio.shape
        oh, ow = h - kh + 1, w - kw + 1
        dims.append(ConvDims(h, w, cin, kh, kw, cout, oh, ow, w * cin, ow * cout))
        h, w = oh, ow
    return dims


def _banded_conv_weight(w_hwio, w_in):
    """Encode the width-direction sliding window of a valid stride-1 conv as a
    dense matmul.  Input rows use col = w*cin + c, output rows col = ow*cout + co:
        BW[i*w_in*cin + (ow+j)*cin + ci, ow*cout + co] = W[i, j, ci, co]
    (zeros elsewhere).  Built once at init with numpy."""
    w = np.asarray(w_hwio, np.float32)
    kh, kw, cin, cout = w.shape
    ow_out = w_in - kw + 1
    bw = np.zeros((kh * w_in * cin, ow_out * cout), np.float32)
    for i in range(kh):
        blk = w[i].reshape(kw * cin, cout)          # (j, c_in) row ordering
        for o in range(ow_out):
            r0 = i * w_in * cin + o * cin
            bw[r0:r0 + kw * cin, o * cout:(o + 1) * cout] = blk
    return bw


def prepare_params(conv_params, linear_params, in_hw):
    """One-time parameter transformation: width-banding, bias tiling, Flatten-order
    permutation of the Linear rows, and bf16 cast of all matmul weights."""
    dims = conv_geometry(in_hw, conv_params)
    conv_ws, conv_bs = [], []
    for (w_hwio, b), d in zip(conv_params, dims):
        conv_ws.append(jnp.asarray(_banded_conv_weight(w_hwio, d.w_in), jnp.bfloat16))
        conv_bs.append(jnp.tile(jnp.asarray(b, jnp.float32), d.ow).reshape(1, d.rw_out))

    w_lin, b_lin = linear_params
    last = dims[-1]
    feat = last.cout * last.oh * last.ow
    assert feat == w_lin.shape[0] == 512, (feat, w_lin.shape)
    # torch.nn.Flatten on NCHW indexes features as (c, h, w); the kernel's natural
    # flatten is (h, w, c).  Permute the Linear rows once so no runtime transpose
    # is ever needed.
    wp = jnp.transpose(jnp.reshape(w_lin, (last.cout, last.oh, last.ow, -1)),
                       (1, 2, 0, 3)).reshape(feat, -1).astype(jnp.bfloat16)
    bl = jnp.asarray(b_lin, jnp.float32).reshape(1, -1)
    return dims, (conv_ws, conv_bs, wp, bl)


def build_forward(dims, outdim, batch):
    """Build the fused forward: one pallas_call, gridless (whole problem < 1 MiB of
    VMEM).  At larger batch/spatial sizes a ("parallel",) grid over the row dim
    (sized against 64 MiB VMEM on v7x) would shard work across TensorCores."""
    nconv = len(dims)
    last = dims[-1]
    feat = last.oh * last.rw_out

    def kernel(*refs):
        x_ref = refs[0]
        w_refs = [refs[1 + 2 * l] for l in range(nconv)]
        b_refs = [refs[2 + 2 * l] for l in range(nconv)]
        wl_ref = refs[1 + 2 * nconv]
        bl_ref = refs[2 + 2 * nconv]
        o_ref = refs[3 + 2 * nconv]
        feats_ref = refs[4 + 2 * nconv]

        d0 = dims[0]
        # Per-batch-element 2-D activations, rows = height, cols = (width, channel).
        cur = [x_ref[pl.ds(n * d0.h_in, d0.h_in), :] for n in range(batch)]

        for l, d in enumerate(dims):
            nxt = []
            for n in range(batch):
                acc = None
                for i in range(d.kh):
                    # Shifted-row slice (the height part of im2col) straight from VMEM.
                    lhs = cur[n][i:i + d.oh, :].astype(jnp.bfloat16)
                    # Width-banded weight block for kernel row i (bf16, prebuilt).
                    rhs = w_refs[l][pl.ds(i * d.rw_in, d.rw_in), :]
                    part = jnp.dot(lhs, rhs, preferred_element_type=jnp.float32)
                    acc = part if acc is None else acc + part
                # Bias + ReLU in f32 (v5e-friendly).
                nxt.append(jnp.maximum(acc + b_refs[l][...], 0.0))
            cur = nxt

        # Flatten per batch element in (h, w, c) order into the feats scratch.
        # Linear weights were permuted to this order at init, so this matches
        # torch.nn.Flatten on NCHW exactly.  Slots are 128-lane aligned here.
        for n in range(batch):
            for oh in range(last.oh):
                feats_ref[pl.ds(n, 1), pl.ds(oh * last.rw_out, last.rw_out)] = (
                    cur[n][oh:oh + 1, :])

        # Final Linear: single lane-dense K=512 matmul.
        logits = jnp.dot(feats_ref[...].astype(jnp.bfloat16), wl_ref[...],
                         preferred_element_type=jnp.float32)
        o_ref[...] = (logits + bl_ref[...]).astype(o_ref.dtype)

    num_inputs = 1 + 2 * nconv + 2
    fused = pl.pallas_call(
        kernel,
        out_shape=jax.ShapeDtypeStruct((batch, outdim), jnp.float32),
        in_specs=[pl.BlockSpec(memory_space=pltpu.MemorySpace.VMEM)] * num_inputs,
        out_specs=pl.BlockSpec(memory_space=pltpu.MemorySpace.VMEM),
        scratch_shapes=[pltpu.VMEM((batch, feat), jnp.float32)],
    )

    @jax.jit
    def forward(x_nchw, conv_ws, conv_bs, wl, bl):
        n, cin, h, w = x_nchw.shape
        # NCHW -> (n*h, w*c) row layout (the reshape after the NHWC transpose is free).
        x2d = jnp.transpose(x_nchw, (0, 2, 3, 1)).reshape(n * h, w * cin)
        args = [x2d]
        for wgt, b in zip(conv_ws, conv_bs):
            args.extend([wgt, b])
        args.extend([wl, bl])
        return fused(*args)

    return forward


def init_params(key, filter_shapes, outdim, in_features=512):
    """Deterministic synthetic init (PyTorch-style uniform fan-in bounds).
    Linear weight rows follow torch's NCHW Flatten ordering."""
    conv_params = []
    for (cin, cout, ksz) in filter_shapes:
        key, k1, k2 = jax.random.split(key, 3)
        bound = 1.0 / (cin * ksz * ksz) ** 0.5
        w = jax.random.uniform(k1, (ksz, ksz, cin, cout), jnp.float32, -bound, bound)
        b = jax.random.uniform(k2, (cout,), jnp.float32, -bound, bound)
        conv_params.append((w, b))
    key, k1, k2 = jax.random.split(key, 3)
    bound = 1.0 / in_features ** 0.5
    w_lin = jax.random.uniform(k1, (in_features, outdim), jnp.float32, -bound, bound)
    b_lin = jax.random.uniform(k2, (outdim,), jnp.float32, -bound, bound)
    return conv_params, (w_lin, b_lin)


def reference_forward(x_nchw, conv_params, linear_params):
    """Pure-JAX f32 reference mirroring the PyTorch module exactly."""
    x = x_nchw
    for w_hwio, b in conv_params:
        w_oihw = jnp.transpose(w_hwio, (3, 2, 0, 1))
        x = lax.conv_general_dilated(x, w_oihw, window_strides=(1, 1), padding="VALID",
                                     dimension_numbers=("NCHW", "OIHW", "NCHW"))
        x = jnp.maximum(x + b[None, :, None, None], 0.0)
    feats = x.reshape(x.shape[0], -1)                 # torch.nn.Flatten on NCHW
    w_lin, b_lin = linear_params
    return feats @ w_lin + b_lin


if __name__ == "__main__":
    # filter_shapes = (in_ch, out_ch, kernel).  Input 8x8 spatial, two 3x3 valid
    # convs: 8 -> 6 -> 4, final features = 32*4*4 = 512, matching the module's
    # Linear(512, outdim).
    filter_shapes = [(4, 16, 3), (16, 32, 3)]
    outdim = 10
    batch, in_h, in_w = 2, 8, 8

    key = jax.random.PRNGKey(0)
    key, pkey, xkey = jax.random.split(key, 3)
    conv_params, linear_params = init_params(pkey, filter_shapes, outdim)
    x = jax.random.normal(xkey, (batch, filter_shapes[0][0], in_h, in_w), jnp.float32)

    dims, (conv_ws, conv_bs, wp, bl) = prepare_params(conv_params, linear_params,
                                                      (in_h, in_w))
    forward = build_forward(dims, outdim, batch)

    out = jax.block_until_ready(forward(x, conv_ws, conv_bs, wp, bl))
    ref = reference_forward(x, conv_params, linear_params)

    assert out.shape == (batch, outdim), out.shape
    assert bool(jnp.all(jnp.isfinite(out)))
    assert bool(jnp.allclose(out, ref, atol=5e-2, rtol=5e-2)), (
        "max abs diff vs reference: %f" % float(jnp.max(jnp.abs(out - ref))))
    print("KERNEL_OK")
</pallas_src>

<mosaic_0001>
module attributes {stable_mosaic.version = 11 : i64} {
  func.func @kernel(%arg0: memref<16x32xf32, #tpu.memory_space<vmem>>, %arg1: memref<96x96xbf16, #tpu.memory_space<vmem>>, %arg2: memref<1x96xf32, #tpu.memory_space<vmem>>, %arg3: memref<288x128xbf16, #tpu.memory_space<vmem>>, %arg4: memref<1x128xf32, #tpu.memory_space<vmem>>, %arg5: memref<512x10xbf16, #tpu.memory_space<vmem>>, %arg6: memref<1x10xf32, #tpu.memory_space<vmem>>, %arg7: memref<2x10xf32, #tpu.memory_space<vmem>>, %arg8: memref<2x512xf32, #tpu.memory_space<vmem>>) attributes {dimension_semantics = [], scalar_prefetch = 0 : i64, scratch_operands = 1 : i64, tpu.core_type = #tpu.core_type<tc>} {
    %c0 = arith.constant 0 : index
    %c0_0 = arith.constant 0 : index
    %0 = vector.load %arg0[%c0, %c0_0] : memref<16x32xf32, #tpu.memory_space<vmem>>, vector<8x32xf32>
    %c8 = arith.constant 8 : index
    %c0_1 = arith.constant 0 : index
    %1 = vector.load %arg0[%c8, %c0_1] : memref<16x32xf32, #tpu.memory_space<vmem>>, vector<8x32xf32>
    %2 = vector.extract_strided_slice %0 {offsets = [0, 0], sizes = [6, 32], strides = [1, 1]} : vector<8x32xf32> to vector<6x32xf32>
    %3 = arith.truncf %2 : vector<6x32xf32> to vector<6x32xbf16>
    %c0_2 = arith.constant 0 : index
    %c0_3 = arith.constant 0 : index
    %4 = vector.load %arg1[%c0_2, %c0_3] : memref<96x96xbf16, #tpu.memory_space<vmem>>, vector<32x96xbf16>
    %cst = arith.constant dense<0.000000e+00> : vector<6x96xf32>
    %5 = tpu.matmul %3, %4, %cst {dimension_numbers = #tpu.dot_dimension_numbers<[1], [0], [0], [1], [0, 0, 1, 1], [], []>} : vector<6x32xbf16>, vector<32x96xbf16>, vector<6x96xf32> -> vector<6x96xf32>
    %6 = vector.extract_strided_slice %0 {offsets = [1, 0], sizes = [6, 32], strides = [1, 1]} : vector<8x32xf32> to vector<6x32xf32>
    %7 = arith.truncf %6 : vector<6x32xf32> to vector<6x32xbf16>
    %c32 = arith.constant 32 : index
    %c0_4 = arith.constant 0 : index
    %8 = vector.load %arg1[%c32, %c0_4] : memref<96x96xbf16, #tpu.memory_space<vmem>>, vector<32x96xbf16>
    %cst_5 = arith.constant dense<0.000000e+00> : vector<6x96xf32>
    %9 = tpu.matmul %7, %8, %cst_5 {dimension_numbers = #tpu.dot_dimension_numbers<[1], [0], [0], [1], [0, 0, 1, 1], [], []>} : vector<6x32xbf16>, vector<32x96xbf16>, vector<6x96xf32> -> vector<6x96xf32>
    %10 = arith.addf %5, %9 : vector<6x96xf32>
    %11 = vector.extract_strided_slice %0 {offsets = [2, 0], sizes = [6, 32], strides = [1, 1]} : vector<8x32xf32> to vector<6x32xf32>
    %12 = arith.truncf %11 : vector<6x32xf32> to vector<6x32xbf16>
    %c64 = arith.constant 64 : index
    %c0_6 = arith.constant 0 : index
    %13 = vector.load %arg1[%c64, %c0_6] : memref<96x96xbf16, #tpu.memory_space<vmem>>, vector<32x96xbf16>
    %cst_7 = arith.constant dense<0.000000e+00> : vector<6x96xf32>
    %14 = tpu.matmul %12, %13, %cst_7 {dimension_numbers = #tpu.dot_dimension_numbers<[1], [0], [0], [1], [0, 0, 1, 1], [], []>} : vector<6x32xbf16>, vector<32x96xbf16>, vector<6x96xf32> -> vector<6x96xf32>
    %15 = arith.addf %10, %14 : vector<6x96xf32>
    %c0_8 = arith.constant 0 : index
    %c0_9 = arith.constant 0 : index
    %16 = vector.load %arg2[%c0_8, %c0_9] : memref<1x96xf32, #tpu.memory_space<vmem>>, vector<1x96xf32>
    %17 = vector.broadcast %16 : vector<1x96xf32> to vector<6x96xf32>
    %18 = arith.addf %15, %17 : vector<6x96xf32>
    %cst_10 = arith.constant 0.000000e+00 : f32
    %19 = vector.broadcast %cst_10 : f32 to vector<6x96xf32>
    %20 = arith.maximumf %18, %19 : vector<6x96xf32>
    %21 = vector.extract_strided_slice %1 {offsets = [0, 0], sizes = [6, 32], strides = [1, 1]} : vector<8x32xf32> to vector<6x32xf32>
    %22 = arith.truncf %21 : vector<6x32xf32> to vector<6x32xbf16>
    %c0_11 = arith.constant 0 : index
    %c0_12 = arith.constant 0 : index
    %23 = vector.load %arg1[%c0_11, %c0_12] : memref<96x96xbf16, #tpu.memory_space<vmem>>, vector<32x96xbf16>
    %cst_13 = arith.constant dense<0.000000e+00> : vector<6x96xf32>
    %24 = tpu.matmul %22, %23, %cst_13 {dimension_numbers = #tpu.dot_dimension_numbers<[1], [0], [0], [1], [0, 0, 1, 1], [], []>} : vector<6x32xbf16>, vector<32x96xbf16>, vector<6x96xf32> -> vector<6x96xf32>
    %25 = vector.extract_strided_slice %1 {offsets = [1, 0], sizes = [6, 32], strides = [1, 1]} : vector<8x32xf32> to vector<6x32xf32>
    %26 = arith.truncf %25 : vector<6x32xf32> to vector<6x32xbf16>
    %c32_14 = arith.constant 32 : index
    %c0_15 = arith.constant 0 : index
    %27 = vector.load %arg1[%c32_14, %c0_15] : memref<96x96xbf16, #tpu.memory_space<vmem>>, vector<32x96xbf16>
    %cst_16 = arith.constant dense<0.000000e+00> : vector<6x96xf32>
    %28 = tpu.matmul %26, %27, %cst_16 {dimension_numbers = #tpu.dot_dimension_numbers<[1], [0], [0], [1], [0, 0, 1, 1], [], []>} : vector<6x32xbf16>, vector<32x96xbf16>, vector<6x96xf32> -> vector<6x96xf32>
    %29 = arith.addf %24, %28 : vector<6x96xf32>
    %30 = vector.extract_strided_slice %1 {offsets = [2, 0], sizes = [6, 32], strides = [1, 1]} : vector<8x32xf32> to vector<6x32xf32>
    %31 = arith.truncf %30 : vector<6x32xf32> to vector<6x32xbf16>
    %c64_17 = arith.constant 64 : index
    %c0_18 = arith.constant 0 : index
    %32 = vector.load %arg1[%c64_17, %c0_18] : memref<96x96xbf16, #tpu.memory_space<vmem>>, vector<32x96xbf16>
    %cst_19 = arith.constant dense<0.000000e+00> : vector<6x96xf32>
    %33 = tpu.matmul %31, %32, %cst_19 {dimension_numbers = #tpu.dot_dimension_numbers<[1], [0], [0], [1], [0, 0, 1, 1], [], []>} : vector<6x32xbf16>, vector<32x96xbf16>, vector<6x96xf32> -> vector<6x96xf32>
    %34 = arith.addf %29, %33 : vector<6x96xf32>
    %c0_20 = arith.constant 0 : index
    %c0_21 = arith.constant 0 : index
    %35 = vector.load %arg2[%c0_20, %c0_21] : memref<1x96xf32, #tpu.memory_space<vmem>>, vector<1x96xf32>
    %36 = vector.broadcast %35 : vector<1x96xf32> to vector<6x96xf32>
    %37 = arith.addf %34, %36 : vector<6x96xf32>
    %cst_22 = arith.constant 0.000000e+00 : f32
    %38 = vector.broadcast %cst_22 : f32 to vector<6x96xf32>
    %39 = arith.maximumf %37, %38 : vector<6x96xf32>
    %40 = vector.extract_strided_slice %20 {offsets = [0, 0], sizes = [4, 96], strides = [1, 1]} : vector<6x96xf32> to vector<4x96xf32>
    %41 = arith.truncf %40 : vector<4x96xf32> to vector<4x96xbf16>
    %c0_23 = arith.constant 0 : index
    %c0_24 = arith.constant 0 : index
    %42 = vector.load %arg3[%c0_23, %c0_24] : memref<288x128xbf16, #tpu.memory_space<vmem>>, vector<96x128xbf16>
    %cst_25 = arith.constant dense<0.000000e+00> : vector<4x128xf32>
    %43 = tpu.matmul %41, %42, %cst_25 {dimension_numbers = #tpu.dot_dimension_numbers<[1], [0], [0], [1], [0, 0, 1, 1], [], []>} : vector<4x96xbf16>, vector<96x128xbf16>, vector<4x128xf32> -> vector<4x128xf32>
    %44 = vector.extract_strided_slice %20 {offsets = [1, 0], sizes = [4, 96], strides = [1, 1]} : vector<6x96xf32> to vector<4x96xf32>
    %45 = arith.truncf %44 : vector<4x96xf32> to vector<4x96xbf16>
    %c96 = arith.constant 96 : index
    %c0_26 = arith.constant 0 : index
    %46 = vector.load %arg3[%c96, %c0_26] : memref<288x128xbf16, #tpu.memory_space<vmem>>, vector<96x128xbf16>
    %cst_27 = arith.constant dense<0.000000e+00> : vector<4x128xf32>
    %47 = tpu.matmul %45, %46, %cst_27 {dimension_numbers = #tpu.dot_dimension_numbers<[1], [0], [0], [1], [0, 0, 1, 1], [], []>} : vector<4x96xbf16>, vector<96x128xbf16>, vector<4x128xf32> -> vector<4x128xf32>
    %48 = arith.addf %43, %47 : vector<4x128xf32>
    %49 = vector.extract_strided_slice %20 {offsets = [2, 0], sizes = [4, 96], strides = [1, 1]} : vector<6x96xf32> to vector<4x96xf32>
    %50 = arith.truncf %49 : vector<4x96xf32> to vector<4x96xbf16>
    %c192 = arith.constant 192 : index
    %c0_28 = arith.constant 0 : index
    %51 = vector.load %arg3[%c192, %c0_28] : memref<288x128xbf16, #tpu.memory_space<vmem>>, vector<96x128xbf16>
    %cst_29 = arith.constant dense<0.000000e+00> : vector<4x128xf32>
    %52 = tpu.matmul %50, %51, %cst_29 {dimension_numbers = #tpu.dot_dimension_numbers<[1], [0], [0], [1], [0, 0, 1, 1], [], []>} : vector<4x96xbf16>, vector<96x128xbf16>, vector<4x128xf32> -> vector<4x128xf32>
    %53 = arith.addf %48, %52 : vector<4x128xf32>
    %c0_30 = arith.constant 0 : index
    %c0_31 = arith.constant 0 : index
    %54 = vector.load %arg4[%c0_30, %c0_31] : memref<1x128xf32, #tpu.memory_space<vmem>>, vector<1x128xf32>
    %55 = vector.broadcast %54 : vector<1x128xf32> to vector<4x128xf32>
    %56 = arith.addf %53, %55 : vector<4x128xf32>
    %cst_32 = arith.constant 0.000000e+00 : f32
    %57 = vector.broadcast %cst_32 : f32 to vector<4x128xf32>
    %58 = arith.maximumf %56, %57 : vector<4x128xf32>
    %59 = vector.extract_strided_slice %39 {offsets = [0, 0], sizes = [4, 96], strides = [1, 1]} : vector<6x96xf32> to vector<4x96xf32>
    %60 = arith.truncf %59 : vector<4x96xf32> to vector<4x96xbf16>
    %c0_33 = arith.constant 0 : index
    %c0_34 = arith.constant 0 : index
    %61 = vector.load %arg3[%c0_33, %c0_34] : memref<288x128xbf16, #tpu.memory_space<vmem>>, vector<96x128xbf16>
    %cst_35 = arith.constant dense<0.000000e+00> : vector<4x128xf32>
    %62 = tpu.matmul %60, %61, %cst_35 {dimension_numbers = #tpu.dot_dimension_numbers<[1], [0], [0], [1], [0, 0, 1, 1], [], []>} : vector<4x96xbf16>, vector<96x128xbf16>, vector<4x128xf32> -> vector<4x128xf32>
    %63 = vector.extract_strided_slice %39 {offsets = [1, 0], sizes = [4, 96], strides = [1, 1]} : vector<6x96xf32> to vector<4x96xf32>
    %64 = arith.truncf %63 : vector<4x96xf32> to vector<4x96xbf16>
    %c96_36 = arith.constant 96 : index
    %c0_37 = arith.constant 0 : index
    %65 = vector.load %arg3[%c96_36, %c0_37] : memref<288x128xbf16, #tpu.memory_space<vmem>>, vector<96x128xbf16>
    %cst_38 = arith.constant dense<0.000000e+00> : vector<4x128xf32>
    %66 = tpu.matmul %64, %65, %cst_38 {dimension_numbers = #tpu.dot_dimension_numbers<[1], [0], [0], [1], [0, 0, 1, 1], [], []>} : vector<4x96xbf16>, vector<96x128xbf16>, vector<4x128xf32> -> vector<4x128xf32>
    %67 = arith.addf %62, %66 : vector<4x128xf32>
    %68 = vector.extract_strided_slice %39 {offsets = [2, 0], sizes = [4, 96], strides = [1, 1]} : vector<6x96xf32> to vector<4x96xf32>
    %69 = arith.truncf %68 : vector<4x96xf32> to vector<4x96xbf16>
    %c192_39 = arith.constant 192 : index
    %c0_40 = arith.constant 0 : index
    %70 = vector.load %arg3[%c192_39, %c0_40] : memref<288x128xbf16, #tpu.memory_space<vmem>>, vector<96x128xbf16>
    %cst_41 = arith.constant dense<0.000000e+00> : vector<4x128xf32>
    %71 = tpu.matmul %69, %70, %cst_41 {dimension_numbers = #tpu.dot_dimension_numbers<[1], [0], [0], [1], [0, 0, 1, 1], [], []>} : vector<4x96xbf16>, vector<96x128xbf16>, vector<4x128xf32> -> vector<4x128xf32>
    %72 = arith.addf %67, %71 : vector<4x128xf32>
    %c0_42 = arith.constant 0 : index
    %c0_43 = arith.constant 0 : index
    %73 = vector.load %arg4[%c0_42, %c0_43] : memref<1x128xf32, #tpu.memory_space<vmem>>, vector<1x128xf32>
    %74 = vector.broadcast %73 : vector<1x128xf32> to vector<4x128xf32>
    %75 = arith.addf %72, %74 : vector<4x128xf32>
    %cst_44 = arith.constant 0.000000e+00 : f32
    %76 = vector.broadcast %cst_44 : f32 to vector<4x128xf32>
    %77 = arith.maximumf %75, %76 : vector<4x128xf32>
    %78 = vector.extract_strided_slice %58 {offsets = [0, 0], sizes = [1, 128], strides = [1, 1]} : vector<4x128xf32> to vector<1x128xf32>
    %c0_45 = arith.constant 0 : index
    %c0_46 = arith.constant 0 : index
    %79 = vector.load %arg8[%c0_45, %c0_46] : memref<2x512xf32, #tpu.memory_space<vmem>>, vector<1x128xf32>
    tpu.vector_store %arg8[%c0_45, %c0_46], %78 {strides = array<i32>} : memref<2x512xf32, #tpu.memory_space<vmem>>, vector<1x128xf32>,
    %80 = vector.extract_strided_slice %58 {offsets = [1, 0], sizes = [1, 128], strides = [1, 1]} : vector<4x128xf32> to vector<1x128xf32>
    %c0_47 = arith.constant 0 : index
    %c128 = arith.constant 128 : index
    %81 = vector.load %arg8[%c0_47, %c128] : memref<2x512xf32, #tpu.memory_space<vmem>>, vector<1x128xf32>
    tpu.vector_store %arg8[%c0_47, %c128], %80 {strides = array<i32>} : memref<2x512xf32, #tpu.memory_space<vmem>>, vector<1x128xf32>,
    %82 = vector.extract_strided_slice %58 {offsets = [2, 0], sizes = [1, 128], strides = [1, 1]} : vector<4x128xf32> to vector<1x128xf32>
    %c0_48 = arith.constant 0 : index
    %c256 = arith.constant 256 : index
    %83 = vector.load %arg8[%c0_48, %c256] : memref<2x512xf32, #tpu.memory_space<vmem>>, vector<1x128xf32>
    tpu.vector_store %arg8[%c0_48, %c256], %82 {strides = array<i32>} : memref<2x512xf32, #tpu.memory_space<vmem>>, vector<1x128xf32>,
    %84 = vector.extract_strided_slice %58 {offsets = [3, 0], sizes = [1, 128], strides = [1, 1]} : vector<4x128xf32> to vector<1x128xf32>
    %c0_49 = arith.constant 0 : index
    %c384 = arith.constant 384 : index
    %85 = vector.load %arg8[%c0_49, %c384] : memref<2x512xf32, #tpu.memory_space<vmem>>, vector<1x128xf32>
    tpu.vector_store %arg8[%c0_49, %c384], %84 {strides = array<i32>} : memref<2x512xf32, #tpu.memory_space<vmem>>, vector<1x128xf32>,
    %86 = vector.extract_strided_slice %77 {offsets = [0, 0], sizes = [1, 128], strides = [1, 1]} : vector<4x128xf32> to vector<1x128xf32>
    %c1 = arith.constant 1 : index
    %c0_50 = arith.constant 0 : index
    %87 = vector.load %arg8[%c1, %c0_50] : memref<2x512xf32, #tpu.memory_space<vmem>>, vector<1x128xf32>
    tpu.vector_store %arg8[%c1, %c0_50], %86 {strides = array<i32>} : memref<2x512xf32, #tpu.memory_space<vmem>>, vector<1x128xf32>,
    %88 = vector.extract_strided_slice %77 {offsets = [1, 0], sizes = [1, 128], strides = [1, 1]} : vector<4x128xf32> to vector<1x128xf32>
    %c1_51 = arith.constant 1 : index
    %c128_52 = arith.constant 128 : index
    %89 = vector.load %arg8[%c1_51, %c128_52] : memref<2x512xf32, #tpu.memory_space<vmem>>, vector<1x128xf32>
    tpu.vector_store %arg8[%c1_51, %c128_52], %88 {strides = array<i32>} : memref<2x512xf32, #tpu.memory_space<vmem>>, vector<1x128xf32>,
    %90 = vector.extract_strided_slice %77 {offsets = [2, 0], sizes = [1, 128], strides = [1, 1]} : vector<4x128xf32> to vector<1x128xf32>
    %c1_53 = arith.constant 1 : index
    %c256_54 = arith.constant 256 : index
    %91 = vector.load %arg8[%c1_53, %c256_54] : memref<2x512xf32, #tpu.memory_space<vmem>>, vector<1x128xf32>
    tpu.vector_store %arg8[%c1_53, %c256_54], %90 {strides = array<i32>} : memref<2x512xf32, #tpu.memory_space<vmem>>, vector<1x128xf32>,
    %92 = vector.extract_strided_slice %77 {offsets = [3, 0], sizes = [1, 128], strides = [1, 1]} : vector<4x128xf32> to vector<1x128xf32>
    %c1_55 = arith.constant 1 : index
    %c384_56 = arith.constant 384 : index
    %93 = vector.load %arg8[%c1_55, %c384_56] : memref<2x512xf32, #tpu.memory_space<vmem>>, vector<1x128xf32>
    tpu.vector_store %arg8[%c1_55, %c384_56], %92 {strides = array<i32>} : memref<2x512xf32, #tpu.memory_space<vmem>>, vector<1x128xf32>,
    %c0_57 = arith.constant 0 : index
    %c0_58 = arith.constant 0 : index
    %94 = vector.load %arg8[%c0_57, %c0_58] : memref<2x512xf32, #tpu.memory_space<vmem>>, vector<2x512xf32>
    %95 = arith.truncf %94 : vector<2x512xf32> to vector<2x512xbf16>
    %c0_59 = arith.constant 0 : index
    %c0_60 = arith.constant 0 : index
    %96 = vector.load %arg5[%c0_59, %c0_60] : memref<512x10xbf16, #tpu.memory_space<vmem>>, vector<512x10xbf16>
    %cst_61 = arith.constant dense<0.000000e+00> : vector<2x10xf32>
    %97 = tpu.matmul %95, %96, %cst_61 {dimension_numbers = #tpu.dot_dimension_numbers<[1], [0], [0], [1], [0, 0, 1, 1], [], []>} : vector<2x512xbf16>, vector<512x10xbf16>, vector<2x10xf32> -> vector<2x10xf32>
    %c0_62 = arith.constant 0 : index
    %c0_63 = arith.constant 0 : index
    %98 = vector.load %arg6[%c0_62, %c0_63] : memref<1x10xf32, #tpu.memory_space<vmem>>, vector<1x10xf32>
    %99 = vector.broadcast %98 : vector<1x10xf32> to vector<2x10xf32>
    %100 = arith.addf %97, %99 : vector<2x10xf32>
    %c0_64 = arith.constant 0 : index
    %c0_65 = arith.constant 0 : index
    %101 = vector.load %arg7[%c0_64, %c0_65] : memref<2x10xf32, #tpu.memory_space<vmem>>, vector<2x10xf32>
    tpu.vector_store %arg7[%c0_64, %c0_65], %100 {strides = array<i32>} : memref<2x10xf32, #tpu.memory_space<vmem>>, vector<2x10xf32>,
    return
  }
}

</mosaic_0001>

<bundles_post_ra>
// kernel: forward.1
= control target key start
LH: loop header
LB: loop body
LE: loop exit
PB: predicated region body
PF: predicated region fallthrough
CT: control target
= control target key end

     0   :  { %v1636_v1 = vmov 0.0   ;;  %vm1637_vm0 = vmmov 0   ;;  %vm58_vm1 = vcmask 261120   ;;  %s2007_s0 = inlined_call_operand.vmem [shape: f32[16,32], index: 0, kind: input, shape index: {}]   ;;  %s2008_s1 = inlined_call_operand.vmem [shape: bf16[96,96], index: 1, kind: input, shape index: {}]   ;;  %s2009_s2 = inlined_call_operand.vmem [shape: f32[1,96], index: 2, kind: input, shape index: {}]   ;;  %s2010_s3 = inlined_call_operand.vmem [shape: bf16[288,128], index: 3, kind: input, shape index: {}]   ;;  %s2011_s4 = inlined_call_operand.vmem [shape: f32[1,128], index: 4, kind: input, shape index: {}]   ;;  %s2012_s5 = inlined_call_operand.vmem [shape: bf16[512,10], index: 5, kind: input, shape index: {}]   ;;  %s2013_s6 = inlined_call_operand.vmem [shape: f32[1,10], index: 6, kind: input, shape index: {}]   ;;  %s2014_s7 = inlined_call_operand.hbm [shape: f32[2,10], index: 7, kind: output, shape index: {}]  }
   0x1   :  { %v1555_v0 = vld [vmem:[%s2008_s1 + $0x10] sm:$0xff]   ;;  %1407 = vmatprep.subr.bf16.mxu0 %v1636_v1  ;;  %1415 = vmatprep.subr.bf16.mxu1 %v1636_v1  ;;  %v1556_v2 = vld [vmem:[%s2008_s1] sm:$0xff]   ;;  %v1557_v3 = vld [vmem:[%s2008_s1 + $0x18] sm:$0xff]  }
   0x2   :  { %1408 = vmatpush3.bf16.msra.mxu0 %v1555_v0  ;;  %1411 = vmatprep.mubr.msk.bf16.mxu0 %vm1637_vm0, %v1636_v1  ;;  %v1558_v4 = vld [vmem:[%s2008_s1 + $0x8] sm:$0xff]   ;;  %v28_v5 = vld [vmem:[%s2007_s0] sm:$0xff]  ;;  %v1741_v22 = vld [vmem:[%s2010_s3 + $0x30] sm:$0xff]  }
   0x3   :  { %1416 = vmatpush3.bf16.msra.mxu1 %v1556_v2  ;;  %1409 = vmatprep.subr.bf16.mxu0 %v1636_v1  ;;  %v30_v6 = vpack.c.bf16 %v28_v5, %v28_v5  ;;  %v29_v7 = vld [vmem:[%s2007_s0 + $0x8] sm:$0xff]  ;;  %v1559_v12 = vld [vmem:[%s2008_s1 + $0x20] sm:$0xff]  }
   0x4   :  { %1417 = vmatprep.subr.bf16.mxu1 %v1636_v1  ;;  %1419 = vmatprep.mubr.msk.bf16.mxu1 %vm1637_vm0, %v1636_v1  ;;  %v227_v10 = vpack.c.bf16 %v29_v7, %v29_v7  ;;  %v1560_v19 = vld [vmem:[%s2008_s1 + $0x28] sm:$0xff]   ;;  %v1732_v21 = vld [vmem:[%s2010_s3] sm:$0xff]  }
   0x5   :  { %v40_v8 = vshrl.u32 %v30_v6, 16  ;;  %v42_v9 = vshll.u32 %v30_v6, 16  ;;  %v161_v14 = vrot.slane %v30_v6, 1  ;;  %v1746_v23 = vld [vmem:[%s2010_s3 + $0x8] sm:$0xff]  }
   0x6   :  { %1410 = vmatpush3.bf16.msra.mxu0 %v1557_v3  ;;  %v231_v13 = vshll.u32 %v227_v10, 16  ;;  %v229_v15 = vshrl.u32 %v227_v10, 16  ;;  %v321_v18 = vrot.slane %v227_v10, 1 }
   0x7   :  { %1418 = vmatpush3.bf16.msra.mxu1 %v1558_v4  ;;  %1423 = vmatprep.subr.bf16.mxu0 %v1636_v1  ;;  %v44_v11 = vrot.slane %v42_v9, 1 }
   0x8   :  { %1431 = vmatprep.subr.bf16.mxu1 %v1636_v1  ;;  %v233_v17 = vrot.slane %v231_v13, 1 }
   0x9   :  { %v45_v16 = vor.u32 %v44_v11, %v40_v8 }
   0xa   :  { %1420 = vmatmul.mubr.msk.bf16.vlgmr.msra.gmra.mrb[0].mxu1 %vm58_vm1, %v30_v6  ;;  %v234_v20 = vor.u32 %v233_v17, %v229_v15 }
   0xb   :  { %1432 = vmatpush3.bf16.msra.mxu1 %v1555_v0  ;;  %1435 = vmatprep.mubr.msk.bf16.mxu1 %vm1637_vm0, %v1636_v1 }
   0xc   :  { %1433 = vmatprep.subr.bf16.mxu1 %v1636_v1  ;;  %1412 = vmatmul.mubr.msk.bf16.vlgmr.msra.gmra.mrb[0].mxu0 %vm58_vm1, %v45_v16 }
   0xd   :  { %1424 = vmatpush3.bf16.msra.mxu0 %v1559_v12  ;;  %1427 = vmatprep.mubr.msk.bf16.mxu0 %vm1637_vm0, %v1636_v1 }
   0xe   :  { %1425 = vmatprep.subr.bf16.mxu0 %v1636_v1 }
   0xf   :  { %1434 = vmatpush3.bf16.msra.mxu1 %v1557_v3 }
  0x10   :  { %1447 = vmatprep.subr.bf16.mxu1 %v1636_v1 }
  0x11   :  { %1426 = vmatpush3.bf16.msra.mxu0 %v1560_v19 }
  0x12   :  { %1436 = vmatmul.mubr.msk.bf16.vlgmr.msra.gmra.mrb[4].mxu1 %vm58_vm1, %v234_v20  ;;  %1439 = vmatprep.subr.bf16.mxu0 %v1636_v1 }
  0x13   :  { %1448 = vmatpush3.bf16.msra.mxu1 %v1559_v12  ;;  %1451 = vmatprep.mubr.msk.bf16.mxu1 %vm1637_vm0, %v1636_v1 }
  0x14   :  { %1449 = vmatprep.subr.bf16.mxu1 %v1636_v1  ;;  %1428 = vmatmul.mubr.msk.bf16.vlgmr.msra.gmra.mrb[4].mxu0 %vm58_vm1, %v161_v14 }
  0x15   :  { %1440 = vmatpush3.bf16.msra.mxu0 %v1556_v2  ;;  %1443 = vmatprep.mubr.msk.bf16.mxu0 %vm1637_vm0, %v1636_v1 }
  0x16   :  { %1441 = vmatprep.subr.bf16.mxu0 %v1636_v1 }
  0x17   :  { %1450 = vmatpush3.bf16.msra.mxu1 %v1560_v19 }
  0x18   :  { %1471 = vmatprep.subr.bf16.mxu1 %v1636_v1 }
  0x19   :  { %1442 = vmatpush3.bf16.msra.mxu0 %v1558_v4 }
  0x1a   :  { %1452 = vmatmul.mubr.msk.bf16.vlgmr.msra.gmra.mrb[8].mxu1 %vm58_vm1, %v321_v18  ;;  %1455 = vmatprep.subr.bf16.mxu0 %v1636_v1 }
  0x1b   :  { %1472 = vmatpush3.bf16.msra.mxu1 %v1732_v21  ;;  %1483 = vmatprep.mubr.msk.bf16.mxu1 %vm1637_vm0, %v1636_v1 }
  0x1c   :  { %1473 = vmatprep.subr.bf16.mxu1 %v1636_v1  ;;  %1444 = vmatmul.mubr.msk.bf16.vlgmr.msra.gmra.mrb[8].mxu0 %vm58_vm1, %v227_v10 }
  0x1d   :  { %1456 = vmatpush3.bf16.msra.mxu0 %v1741_v22  ;;  %1467 = vmatprep.mubr.msk.bf16.mxu0 %vm1637_vm0, %v1636_v1 }
  0x1e   :  { %1457 = vmatprep.subr.bf16.mxu0 %v1636_v1 }
  0x1f   :  { %1474 = vmatpush3.bf16.msra.mxu1 %v1746_v23 }
  0x20   :  { %1475 = vmatprep.subr.bf16.mxu1 %v1636_v1 }
  0x21   :  { %12 = vsyncpa [#allocation4], 0  ;;  %v1764_v24 = vld [vmem:[%s2010_s3 + $0x10] sm:$0xff]   ;;  %v1770_v25 = vld [vmem:[%s2010_s3 + $0x38] sm:$0xff]   ;;  %vm436_vm2 = vcmask 785408   ;;  %s1639_s0 = smov [#allocation3]  }
  0x22   :  { %1458 = vmatpush3.bf16.msra.mxu0 %v1770_v25  ;;  %v1777_v26 = vld [vmem:[%s2010_s3 + $0x18] sm:$0xff]   ;;  %v1782_v27 = vld [vmem:[%s2010_s3 + $0x40] sm:$0xff]   ;;  %v1798_v29 = vld [vmem:[%s2010_s3 + $0x48] sm:$0xff]   ;;  %s1220_s15 = sshll.u32 %s1639_s0, 4  ;;  %vm1212_vm3 = vcmask 74752   ;;  %s1221_s15 = int_to_ptr.vmem [resolvable:$true] %s1220_s15 }
  0x23   :  { %1476 = vmatpush3.bf16.msra.mxu1 %v1764_v24  ;;  %1459 = vmatprep.subr.bf16.mxu0 %v1636_v1  ;;  %v1791_v28 = vld [vmem:[%s2010_s3 + $0x20] sm:$0xff]   ;;  %v1805_v30 = vld [vmem:[%s2010_s3 + $0x28] sm:$0xff]   ;;  %v1812_v31 = vld [vmem:[%s2010_s3 + $0x50] sm:$0xff]   ;;  %s1612_s1 = scalar_lea.vmem %s1221_s15, 32  ;;  %p1617_p1 = scmp.lt.s32.totalorder %s1221_s15, %s1221_s15 }
  0x24   :  { %1477 = vmatprep.subr.bf16.mxu1 %v1636_v1  ;;  %v1820_v32 = vld [vmem:[%s2010_s3 + $0x58] sm:$0xff]   ;;  %v1237_v46 = vld [vmem:[%s2009_s2] ss:$0 sm:$0xff]  ;;  %v1574_v9 = vld [vmem:[%s2010_s3 + $0x68] sm:$0xff]   ;;  %p1613_p0 = scmp.ne.s32.totalorder %s1221_s15, %s1612_s1  ;;  %p1618_p2 = scmp.lt.s32.totalorder %s1612_s1, %s1612_s1 }
  0x25   :  { %v1573_v5 = vld [vmem:[%s2010_s3 + $0x60] sm:$0xff]   ;;  %v1575_v11 = vld [vmem:[%s2010_s3 + $0x70] sm:$0xff]   ;;  %v1576_v13 = vld [vmem:[%s2010_s3 + $0x78] sm:$0xff]  }
  0x26   :  { %1460 = vmatpush3.bf16.msra.mxu0 %v1782_v27  ;;  %v1577_v16 = vld [vmem:[%s2010_s3 + $0x80] sm:$0xff]   ;;  %v1578_v18 = vld [vmem:[%s2010_s3 + $0x88] sm:$0xff]   ;;  %p1619_p3 = por %p1618_p2, %p1617_p1 }
  0x27   :  { %1478 = vmatpush3.bf16.msra.mxu1 %v1777_v26  ;;  %1461 = vmatprep.subr.bf16.mxu0 %v1636_v1 }
  0x28   :  { %1479 = vmatprep.subr.bf16.mxu1 %v1636_v1  ;;  %p1620_p4 = pnand %p1619_p3, %p1613_p0 }
  0x2a   :  { %1462 = vmatpush3.bf16.msra.mxu0 %v1798_v29 }
  0x2b   :  { %1480 = vmatpush3.bf16.msra.mxu1 %v1791_v28  ;;  %1463 = vmatprep.subr.bf16.mxu0 %v1636_v1 }
  0x2c   :  { %1481 = vmatprep.subr.bf16.mxu1 %v1636_v1 }
  0x2e   :  { %1464 = vmatpush3.bf16.msra.mxu0 %v1812_v31 }
  0x2f   :  { %1482 = vmatpush3.bf16.msra.mxu1 %v1805_v30  ;;  %1465 = vmatprep.subr.bf16.mxu0 %v1636_v1 }
  0x30   :  { %1503 = vmatprep.subr.bf16.mxu1 %v1636_v1 }
  0x32   :  { %1466 = vmatpush3.bf16.msra.mxu0 %v1820_v32 }
  0x33   :  { %1487 = vmatprep.subr.bf16.mxu0 %v1636_v1 }
  0xdd   :  { %v150_v33 = vpop.f32.mrb[0].mxu1 }
  0xde   :  { %v1421_v34 = vpop.f32.mrb[1].mxu1 }
  0xdf   :  { %v153_v35 = vpop.f32.mrb[2].mxu1  ;;  %v96_v36 = vpop.f32.mrb[0].mxu0  ;;  %v1593_v34 = vld [vmem:[%s2012_s5 + $0xd8] sm:$0xff]  }
  0xe0   :  { %v1422_v37 = vpop.f32.mrb[3].mxu1  ;;  %v1413_v38 = vpop.f32.mrb[1].mxu0  ;;  %v151_v39 = vadd.f32 %v150_v33, %v96_v36  ;;  %v1592_v33 = vld [vmem:[%s2012_s5 + $0x18] sm:$0xff]   ;;  %v1595_v36 = vld [vmem:[%s2012_s5 + $0x60] sm:$0xff]  }
  0xe1   :  { %v99_v40 = vpop.f32.mrb[2].mxu0  ;;  %v1594_v35 = vld [vmem:[%s2012_s5 + $0x98] sm:$0xff]   ;;  %v1596_v37 = vld [vmem:[%s2012_s5 + $0x20] sm:$0xff]  }
  0xe2   :  { %v1414_v41 = vpop.f32.mrb[3].mxu0  ;;  %v1597_v38 = vld [vmem:[%s2012_s5 + $0xe0] sm:$0xff]   ;;  %v1599_v40 = vld [vmem:[%s2012_s5 + $0x68] sm:$0xff]  }
  0xe3   :  { %v1600_v41 = vld [vmem:[%s2012_s5 + $0x28] sm:$0xff]  }
  0xe5   :  { %v272_v42 = vpop.f32.mrb[4].mxu1 }
  0xe6   :  { %v1437_v43 = vpop.f32.mrb[5].mxu1 }
  0xe7   :  { %v275_v44 = vpop.f32.mrb[6].mxu1  ;;  %v211_v45 = vpop.f32.mrb[4].mxu0  ;;  %v1603_v43 = vld [vmem:[%s2012_s5 + $0x70] sm:$0xff]  }
  0xe8   :  { %v1438_v47 = vpop.f32.mrb[7].mxu1  ;;  %v217_v48 = vadd.f32 %v211_v45, %v151_v39  ;;  %v1429_v49 = vpop.f32.mrb[5].mxu0  ;;  %v1598_v39 = vld [vmem:[%s2012_s5 + $0xa0] sm:$0xff]   ;;  %v1602_v44 = vld [vmem:[%s2012_s5 + $0xa8] sm:$0xff]   ;;  %v1605_v45 = vld [vmem:[%s2012_s5 + $0xf0] sm:$0xff]  }
  0xe9   :  { %v214_v50 = vpop.f32.mrb[6].mxu0  ;;  %v1607_v47 = vld [vmem:[%s2012_s5 + $0x78] sm:$0xff]  }
  0xea   :  { %v225_v51 = vadd.f32 %v1237_v46, %v217_v48  ;;  %v1430_v52 = vpop.f32.mrb[7].mxu0  ;;  %v1606_v48 = vld [vmem:[%s2012_s5 + $0xb0] sm:$0xff]   ;;  %v1609_v49 = vld [vmem:[%s2012_s5 + $0xf8] sm:$0xff]  }
  0xeb   :  { %v1608_v50 = vld [vmem:[%s2012_s5 + $0x38] sm:$0xff]  }
  0xec   :  { %v226_v53 = vmax.f32 %v225_v51, 0.0  ;;  %v1610_v51 = vld [vmem:[%s2012_s5 + $0xb8] sm:$0xff]  }
  0xed   :  { %v359_v54 = vpop.f32.mrb[8].mxu1 }
  0xee   :  { %v1453_v55 = vpop.f32.mrb[9].mxu1  ;;  %v368_v56 = vpack.c.bf16 %v226_v53, %v226_v53 }
  0xef   :  { %v362_v57 = vpop.f32.mrb[10].mxu1  ;;  %v314_v58 = vpop.f32.mrb[8].mxu0 }
  0xf0   :  { %v1454_v59 = vpop.f32.mrb[11].mxu1  ;;  %v396_v60 = vshll.u32 %v368_v56, 16  ;;  %1484 = vmatmul.mubr.msk.bf16.vlgmr.msra.gmra.mrb[12].mxu1 %vm436_vm2, %v368_v56  ;;  %v315_v61 = vadd.f32 %v314_v58, %v272_v42  ;;  %v1445_v62 = vpop.f32.mrb[9].mxu0  ;;  %v394_v0 = vshrl.u32 %v368_v56, 16  ;;  %v571_v19 = vrot.slane %v368_v56, 1  ;;  %v1601_v42 = vld [vmem:[%s2012_s5 + $0xe8] sm:$0xff]  }
  0xf1   :  { %1504 = vmatpush3.bf16.msra.mxu1 %v1741_v22  ;;  %v317_v63 = vpop.f32.mrb[10].mxu0  ;;  %1515 = vmatprep.mubr.msk.bf16.mxu1 %vm1637_vm0, %v1636_v1  ;;  %v1580_v22 = vld [vmem:[%s2012_s5] sm:$0xff]  }
  0xf2   :  { %v398_v2 = vrot.slane %v396_v60, 1  ;;  %1505 = vmatprep.subr.bf16.mxu1 %v1636_v1  ;;  %v365_v3 = vadd.f32 %v359_v54, %v315_v61  ;;  %v1446_v4 = vpop.f32.mrb[11].mxu0  ;;  %v1638_v63 = vmov 1983009808  }
  0xf4   :  { %v399_v6 = vor.u32 %v398_v2, %v394_v0  ;;  %v366_v7 = vadd.f32 %v1237_v46, %v365_v3  ;;  %v1604_v46 = vld [vmem:[%s2012_s5 + $0x30] sm:$0xff]   ;;  %v805_v0 = vunpack.c.l.s4 %v1638_v63  ;;  %v807_v2 = vlaneseq }
  0xf5   :  { %1506 = vmatpush3.bf16.msra.mxu1 %v1770_v25  ;;  %v1584_v25 = vld [vmem:[%s2012_s5 + $0x8] sm:$0xff]  }
  0xf6   :  { %1468 = vmatmul.mubr.msk.bf16.vlgmr.msra.gmra.mrb[12].mxu0 %vm436_vm2, %v399_v6  ;;  %1507 = vmatprep.subr.bf16.mxu1 %v1636_v1  ;;  %v367_v8 = vmax.f32 %v366_v7, 0.0  ;;  %v808_v6 = vshrl.u32 %v807_v2, 7 }
  0xf7   :  { %1488 = vmatpush3.bf16.msra.mxu0 %v1573_v5  ;;  %1499 = vmatprep.mubr.msk.bf16.mxu0 %vm1637_vm0, %v1636_v1 }
  0xf8   :  { %v661_v10 = vpack.c.bf16 %v367_v8, %v367_v8  ;;  %1489 = vmatprep.subr.bf16.mxu0 %v1636_v1  ;;  %v1262_v8 = vld [vmem:[%s2011_s4] ss:$0 sm:$0xff] }
  0xf9   :  { %1508 = vmatpush3.bf16.msra.mxu1 %v1782_v27  ;;  %v1586_v27 = vld [vmem:[%s2012_s5 + $0x88] sm:$0xff]  }
  0xfa   :  { %1509 = vmatprep.subr.bf16.mxu1 %v1636_v1  ;;  %v665_v12 = vshll.u32 %v661_v10, 16  ;;  %v663_v14 = vshrl.u32 %v661_v10, 16  ;;  %v755_v20 = vrot.slane %v661_v10, 1 }
  0xfb   :  { %1490 = vmatpush3.bf16.msra.mxu0 %v1574_v9 }
  0xfc   :  { %1491 = vmatprep.subr.bf16.mxu0 %v1636_v1  ;;  %v667_v15 = vrot.slane %v665_v12, 1 }
  0xfd   :  { %1510 = vmatpush3.bf16.msra.mxu1 %v1798_v29  ;;  %v1588_v29 = vld [vmem:[%s2012_s5 + $0x10] sm:$0xff]  }
  0xfe   :  { %1511 = vmatprep.subr.bf16.mxu1 %v1636_v1  ;;  %v668_v17 = vor.u32 %v667_v15, %v663_v14 }
  0xff   :  { %1492 = vmatpush3.bf16.msra.mxu0 %v1575_v11 }
 0x100   :  { %1493 = vmatprep.subr.bf16.mxu0 %v1636_v1 }
 0x101   :  { %1512 = vmatpush3.bf16.msra.mxu1 %v1812_v31  ;;  %v1590_v31 = vld [vmem:[%s2012_s5 + $0x90] sm:$0xff]  }
 0x102   :  { %1513 = vmatprep.subr.bf16.mxu1 %v1636_v1 }
 0x103   :  { %1494 = vmatpush3.bf16.msra.mxu0 %v1576_v13 }
 0x104   :  { %1495 = vmatprep.subr.bf16.mxu0 %v1636_v1 }
 0x105   :  { %1514 = vmatpush3.bf16.msra.mxu1 %v1820_v32  ;;  %v1591_v32 = vld [vmem:[%s2012_s5 + $0x58] sm:$0xff]  }
 0x106   :  { %1535 = vmatprep.subr.bf16.mxu1 %v1636_v1 }
 0x107   :  { %1496 = vmatpush3.bf16.msra.mxu0 %v1577_v16 }
 0x108   :  { %1516 = vmatmul.mubr.msk.bf16.vlgmr.msra.gmra.mrb[16].mxu1 %vm436_vm2, %v668_v17  ;;  %1497 = vmatprep.subr.bf16.mxu0 %v1636_v1 }
 0x109   :  { %1536 = vmatpush3.bf16.msra.mxu1 %v1573_v5  ;;  %1547 = vmatprep.mubr.msk.bf16.mxu1 %vm1637_vm0, %v1636_v1  ;;  %v806_v5 = vunpack.c.0.s8 %v805_v0 }
 0x10a   :  { %1537 = vmatprep.subr.bf16.mxu1 %v1636_v1 }
 0x10b   :  { %1498 = vmatpush3.bf16.msra.mxu0 %v1578_v18 }
 0x10c   :  { %1519 = vmatprep.subr.bf16.mxu0 %v1636_v1 }
 0x10d   :  { %1538 = vmatpush3.bf16.msra.mxu1 %v1574_v9 }
 0x10e   :  { %1500 = vmatmul.mubr.msk.bf16.vlgmr.msra.gmra.mrb[16].mxu0 %vm436_vm2, %v571_v19  ;;  %1539 = vmatprep.subr.bf16.mxu1 %v1636_v1 }
 0x10f   :  { %1520 = vmatpush3.bf16.msra.mxu0 %v1732_v21  ;;  %1531 = vmatprep.mubr.msk.bf16.mxu0 %vm1637_vm0, %v1636_v1  ;;  %v1579_v21 = vld [vmem:[%s2012_s5 + $0x40] sm:$0xff]  }
 0x110   :  { %1521 = vmatprep.subr.bf16.mxu0 %v1636_v1 }
 0x111   :  { %1540 = vmatpush3.bf16.msra.mxu1 %v1575_v11 }
 0x112   :  { %1541 = vmatprep.subr.bf16.mxu1 %v1636_v1 }
 0x113   :  { %1522 = vmatpush3.bf16.msra.mxu0 %v1746_v23  ;;  %v1581_v23 = vld [vmem:[%s2012_s5 + $0xc0] sm:$0xff]  }
 0x114   :  { %1523 = vmatprep.subr.bf16.mxu0 %v1636_v1 }
 0x115   :  { %1542 = vmatpush3.bf16.msra.mxu1 %v1576_v13  ;;  %v809_v13 = vsub.s32 %v806_v5, %v808_v6 }
 0x116   :  { %1543 = vmatprep.subr.bf16.mxu1 %v1636_v1 }
 0x117   :  { %1524 = vmatpush3.bf16.msra.mxu0 %v1764_v24  ;;  %v1583_v24 = vld [vmem:[%s2012_s5 + $0x48] sm:$0xff]  }
 0x118   :  { %1525 = vmatprep.subr.bf16.mxu0 %v1636_v1 }
 0x119   :  { %1544 = vmatpush3.bf16.msra.mxu1 %v1577_v16 }
 0x11a   :  { %1545 = vmatprep.subr.bf16.mxu1 %v1636_v1 }
 0x11b   :  { %1526 = vmatpush3.bf16.msra.mxu0 %v1777_v26  ;;  %v1585_v26 = vld [vmem:[%s2012_s5 + $0xc8] sm:$0xff]  }
 0x11c   :  { %1527 = vmatprep.subr.bf16.mxu0 %v1636_v1 }
 0x11d   :  { %1546 = vmatpush3.bf16.msra.mxu1 %v1578_v18 }
 0x11e   :  { %1385 = vmatprep.subr.bf16.mxu1 %v1581_v23 }
 0x11f   :  { %1528 = vmatpush3.bf16.msra.mxu0 %v1791_v28  ;;  %v1587_v28 = vld [vmem:[%s2012_s5 + $0x50] sm:$0xff]  }
 0x120   :  { %1548 = vmatmul.mubr.msk.bf16.vlgmr.msra.gmra.mrb[20].mxu1 %vm436_vm2, %v755_v20  ;;  %1529 = vmatprep.subr.bf16.mxu0 %v1636_v1  ;;  %v1582_v1 = vld [vmem:[%s2012_s5 + $0x80] sm:$0xff]  }
 0x121   :  { %1386 = vmatpush3.bf16.msra.mxu1 %v1582_v1 }
 0x122   :  { %1387 = vmatprep.subr.bf16.mxu1 %v1585_v26 }
 0x123   :  { %1530 = vmatpush3.bf16.msra.mxu0 %v1805_v30  ;;  %v1589_v30 = vld [vmem:[%s2012_s5 + $0xd0] sm:$0xff]  }
 0x124   :  { %1363 = vmatprep.subr.bf16.mxu0 %v1579_v21 }
 0x125   :  { %1388 = vmatpush3.bf16.msra.mxu1 %v1586_v27 }
 0x126   :  { %1532 = vmatmul.mubr.msk.bf16.vlgmr.msra.gmra.mrb[20].mxu0 %vm436_vm2, %v661_v10  ;;  %1389 = vmatprep.subr.bf16.mxu1 %v1589_v30 }
 0x127   :  { %1364 = vmatpush3.bf16.msra.mxu0 %v1580_v22 }
 0x128   :  { %1365 = vmatprep.subr.bf16.mxu0 %v1583_v24 }
 0x129   :  { %1390 = vmatpush3.bf16.msra.mxu1 %v1590_v31 }
 0x12a   :  { %1391 = vmatprep.subr.bf16.mxu1 %v1593_v34 }
 0x12b   :  { %1366 = vmatpush3.bf16.msra.mxu0 %v1584_v25 }
 0x12c   :  { %1367 = vmatprep.subr.bf16.mxu0 %v1587_v28 }
 0x12d   :  { %1392 = vmatpush3.bf16.msra.mxu1 %v1594_v35 }
 0x12e   :  { %1393 = vmatprep.subr.bf16.mxu1 %v1597_v38 }
 0x12f   :  { %1368 = vmatpush3.bf16.msra.mxu0 %v1588_v29 }
 0x130   :  { %1369 = vmatprep.subr.bf16.mxu0 %v1591_v32 }
 0x131   :  { %1394 = vmatpush3.bf16.msra.mxu1 %v1598_v39 }
 0x132   :  { %1395 = vmatprep.subr.bf16.mxu1 %v1601_v42 }
 0x133   :  { %1370 = vmatpush3.bf16.msra.mxu0 %v1592_v33 }
 0x134   :  { %1371 = vmatprep.subr.bf16.mxu0 %v1595_v36 }
 0x135   :  { %1396 = vmatpush3.bf16.msra.mxu1 %v1602_v44 }
 0x136   :  { %1397 = vmatprep.subr.bf16.mxu1 %v1605_v45 }
 0x137   :  { %1372 = vmatpush3.bf16.msra.mxu0 %v1596_v37 }
 0x138   :  { %1373 = vmatprep.subr.bf16.mxu0 %v1599_v40 }
 0x139   :  { %1398 = vmatpush3.bf16.msra.mxu1 %v1606_v48 }
 0x13a   :  { %1399 = vmatprep.subr.bf16.mxu1 %v1609_v49 }
 0x13b   :  { %1374 = vmatpush3.bf16.msra.mxu0 %v1600_v41 }
 0x13c   :  { %1375 = vmatprep.subr.bf16.mxu0 %v1603_v43 }
 0x13d   :  { %1400 = vmatpush3.bf16.msra.mxu1 %v1610_v51 }
 0x13f   :  { %1376 = vmatpush3.bf16.msra.mxu0 %v1604_v46  ;;  %v1270_v46 = vld [vmem:[%s2013_s6] ss:$0 sm:$0xff] }
 0x140   :  { %1377 = vmatprep.subr.bf16.mxu0 %v1607_v47 }
 0x143   :  { %1378 = vmatpush3.bf16.msra.mxu0 %v1608_v50 }
 0x1c3   :  { %v552_v52 = vpop.f32.mrb[12].mxu1 }
 0x1c4   :  { %v1485_v53 = vpop.f32.mrb[13].mxu1 }
 0x1c5   :  { %v555_v54 = vpop.f32.mrb[14].mxu1 }
 0x1c6   :  { %v1486_v55 = vpop.f32.mrb[15].mxu1 }
 0x1c9   :  { %v474_v56 = vpop.f32.mrb[12].mxu0 }
 0x1ca   :  { %v553_v57 = vadd.f32 %v552_v52, %v474_v56  ;;  %v1469_v58 = vpop.f32.mrb[13].mxu0 }
 0x1cb   :  { %v477_v59 = vpop.f32.mrb[14].mxu0 }
 0x1cc   :  { %v1470_v60 = vpop.f32.mrb[15].mxu0 }
 0x1db   :  { %v706_v61 = vpop.f32.mrb[16].mxu1 }
 0x1dc   :  { %v1517_v62 = vpop.f32.mrb[17].mxu1 }
 0x1dd   :  { %v709_v3 = vpop.f32.mrb[18].mxu1 }
 0x1de   :  { %v1518_v4 = vpop.f32.mrb[19].mxu1 }
 0x1e1   :  { %v645_v7 = vpop.f32.mrb[16].mxu0 }
 0x1e2   :  { %v651_v9 = vadd.f32 %v645_v7, %v553_v57  ;;  %v1501_v10 = vpop.f32.mrb[17].mxu0 }
 0x1e3   :  { %v648_v11 = vpop.f32.mrb[18].mxu0 }
 0x1e4   :  { %v659_v12 = vadd.f32 %v1262_v8, %v651_v9  ;;  %v1502_v14 = vpop.f32.mrb[19].mxu0 }
 0x1e6   :  { %v660_v15 = vmax.f32 %v659_v12, 0.0 }
 0x1e8   :  { %802 = vst [vmem:[#allocation2] sm:$0x1] %v660_v15  ;;  %v810_v16 = vrot.slane %v660_v15, %v809_v13 }
 0x1ea   :  { %v1266_v17 = vrot.slane %v810_v16, 9  ;;  %v815_v18 = vcombine.high %v810_v16, %v810_v16 }
 0x1ec   :  { %814 = vst [vmem:[#allocation2 + $0x2] sm:$0x1] %v1266_v17  ;;  %817 = vst [vmem:[#allocation2 + $0x4] sm:$0x1] %v815_v18  ;;  %v1267_v19 = vrot.slane %v815_v18, 9 }
 0x1ee   :  { %821 = vst [vmem:[#allocation2 + $0x6] sm:$0x1] %v1267_v19 }
 0x1f3   :  { %v793_v20 = vpop.f32.mrb[20].mxu1 }
 0x1f4   :  { %v1549_v21 = vpop.f32.mrb[21].mxu1 }
 0x1f5   :  { %v796_v22 = vpop.f32.mrb[22].mxu1 }
 0x1f6   :  { %v1550_v23 = vpop.f32.mrb[23].mxu1 }
 0x1f9   :  { %v748_v1 = vpop.f32.mrb[20].mxu0 }
 0x1fa   :  { %v749_v24 = vadd.f32 %v748_v1, %v706_v61  ;;  %v1533_v25 = vpop.f32.mrb[21].mxu0 }
 0x1fb   :  { %v751_v26 = vpop.f32.mrb[22].mxu0 }
 0x1fc   :  { %v799_v27 = vadd.f32 %v793_v20, %v749_v24  ;;  %v1534_v28 = vpop.f32.mrb[23].mxu0 }
 0x1fe   :  { %v800_v29 = vadd.f32 %v1262_v8, %v799_v27 }
 0x200   :  { %v801_v30 = vmax.f32 %v800_v29, 0.0 }
 0x202   :  { %822 = vst [vmem:[#allocation2 + $0x1] sm:$0x1] %v801_v30  ;;  %v830_v31 = vrot.slane %v801_v30, %v809_v13 }
 0x204   :  { %v1268_v32 = vrot.slane %v830_v31, 9  ;;  %v835_v33 = vcombine.high %v830_v31, %v830_v31 }
 0x206   :  { %834 = vst [vmem:[#allocation2 + $0x3] sm:$0x1] %v1268_v32  ;;  %837 = vst [vmem:[#allocation2 + $0x5] sm:$0x1] %v835_v33  ;;  %v1269_v34 = vrot.slane %v835_v33, 9 }
 0x208   :  { %841 = vst [vmem:[#allocation2 + $0x7] sm:$0x1] %v1269_v34 }
 0x20f   :  { %v842_v35 = vld [vmem:[#allocation2] sm:$0xff] }
 0x210   :  { %v851_v36 = vrot.slane %v842_v35, %v809_v13  ;;  %v844_v37 = vcombine.high %v842_v35, %v842_v35 }
 0x212   :  { %v859_v38 = vcombine.high %v851_v36, %v851_v36  ;;  %v858_v39 = vrot.slane %v844_v37, %v809_v13  ;;  %v865_v42 = vpack.c.bf16 %v851_v36, %v851_v36 }
 0x214   :  { %v866_v40 = vpack.c.bf16 %v859_v38, %v859_v38  ;;  %v860_v41 = vcombine.high %v858_v39, %v858_v39  ;;  %v867_v44 = vpack.c.bf16 %v858_v39, %v858_v39 }
 0x216   :  { %1164 = vmatprep.mubr.bf16.mxu0 %v866_v40  ;;  %v868_v43 = vpack.c.bf16 %v860_v41, %v860_v41 }
 0x217   :  { %1165 = vmatmul.mubr.bf16.vlgmr.msra.gmra.mrb[24].mxu0 %v865_v42 }
 0x218   :  { %1204 = vmatprep.mubr.bf16.mxu1 %v868_v43 }
 0x219   :  { %1205 = vmatmul.mubr.bf16.vlgmr.msra.gmra.mrb[24].mxu1 %v867_v44 }
 0x2ea   :  { %v1379_v45 = vpop.f32.mrb[24].mxu0 }
 0x2eb   :  { %v1380_v47 = vpop.f32.mrb[25].mxu0 }
 0x2ec   :  { %v1381_v48 = vadd.f32 %v1380_v47, %v1379_v45  ;;  %v1382_v49 = vpop.f32.mrb[26].mxu0  ;;  %v1401_v50 = vpop.f32.mrb[24].mxu1 }
 0x2ed   :  { %v1383_v51 = vpop.f32.mrb[27].mxu0  ;;  %v1402_v52 = vpop.f32.mrb[25].mxu1 }
 0x2ee   :  { %v1167_v53 = vadd.f32 %v1381_v48, %v1270_v46  ;;  %v1403_v54 = vadd.f32 %v1402_v52, %v1401_v50  ;;  %v1404_v55 = vpop.f32.mrb[26].mxu1 }
 0x2ef   :  { %v1405_v56 = vpop.f32.mrb[27].mxu1 }
 0x2f0   :  { %v1207_v57 = vadd.f32 %v1403_v54, %v1167_v53 }
 0x2f2   :  { %1213 = vst.msk [vmem:[#allocation3] sm:$0x3] %vm1212_vm3, %v1207_v57 }
 0x2f3   :  { %1623 = shalt.err (!%p1620_p4)
}
 0x2f4   :  { %s1624_s16 = scalar_lea.hbm %s2014_s7, 32 }
 0x2f5   :  { %p1625_p5 = scmp.ne.s32.totalorder %s2014_s7, %s1624_s16  ;;  %p1628_p6 = scmp.lt.u32.totalorder %s1624_s16, %s2014_s7 }
 0x2f7   :  { %p1630_p7 = pnand %p1628_p6, %p1625_p5 }
 0x2f9   :  { %1633 = shalt.err (!%p1630_p7)
}
 0x2fa   :  { %1223 = dma.vmem_to_hbm [thread:$0]  %s1221_s15, 32, %s2014_s7, [#allocation4]  }
 0x2fb   :  { %1634 = dma.done.wait [#allocation4], 32  }
 0x2fc   :  { %1635 = vsyncadd [#allocation4], 4294967264 }
 0x2fd   :  { %1227 = vsyncpa [#allocation4], 1 }

</bundles_post_ra>
